<compile_context>
chip_gen: v5e
topology: v5e:2x2
jax: 0.10.0
libtpu: 0.0.40
codegen_flags: <defaults>
</compile_context>

<pallas_src>
import functools

import jax
import jax.numpy as jnp
from jax.experimental import pallas as pl
from jax.experimental.pallas import tpu as pltpu

_LANE = 128
_BF16_SUBLANE = 16   # bf16 packs two rows per sublane -> round row tiles to 16


def _round_up(x, m):
    return ((x + m - 1) // m) * m


def _pad2d(a, rows, cols):
    r, c = a.shape
    return jnp.pad(a, ((0, rows - r), (0, cols - c)))


def _mlp_kernel(x_ref, *refs, num_layers, layer_widths, out_dim, matmul_dtype):
    """Fused MLP over one row tile.

    refs = (w0, ..., w_{L-1}, bias_stack, out_ref)
      w_i        : (k_i, n_pad_i) in matmul_dtype (zero padded)
      bias_stack : (L, max_pad_width) float32 (zero padded)
      out_ref    : (tile_rows, out_dim) float32 (lane-narrow writeback)
    """
    out_ref = refs[-1]
    bias_ref = refs[-2]
    w_refs = refs[:num_layers]

    h = x_ref[...]                                           # (tile_rows, in_dim) bf16
    for layer in range(num_layers):
        acc = jnp.dot(h, w_refs[layer][...],
                      preferred_element_type=jnp.float32)    # MXU, f32 accumulate
        b = bias_ref[layer, :layer_widths[layer]]            # one bias row, static slice
        h = acc + b[None, :]                                 # f32 bias add (VPU)
        if layer < num_layers - 1:
            h = jnp.maximum(h, 0.0).astype(matmul_dtype)     # ReLU, back to bf16 for MXU
    # Only the real output columns are written back to HBM.
    out_ref[...] = h[:, :out_dim].astype(out_ref.dtype)


def prepare_params(weights, biases, *, matmul_dtype=jnp.bfloat16):
    """One-time parameter prep, hoisted out of the per-call path.

    weights: list of (d_in, d_out) float32   (h = h @ W + b layout)
    biases : list of (d_out,) or (1, d_out) float32
    Returns (w_pad, b_stack):
      w_pad  : tuple of zero-padded matmul_dtype weights; hidden/output widths
               padded to 128 lanes, input feature dim left unpadded.
      b_stack: (num_layers, max_padded_width) float32 (single tiny DMA).
    """
    in_dim = weights[0].shape[0]
    k_dims = [in_dim] + [_round_up(w.shape[1], _LANE) for w in weights[:-1]]
    n_dims = [_round_up(w.shape[1], _LANE) for w in weights]
    max_w = max(n_dims)

    w_pad = tuple(
        _pad2d(jnp.asarray(w, jnp.float32), k_dims[i], n_dims[i]).astype(matmul_dtype)
        for i, w in enumerate(weights)
    )
    b_rows = []
    for b in biases:
        b_flat = jnp.reshape(jnp.asarray(b, jnp.float32), (-1,))
        b_rows.append(jnp.pad(b_flat, (0, max_w - b_flat.shape[0])))
    b_stack = jnp.stack(b_rows, axis=0)
    return w_pad, b_stack


def mlp_forward(x, w_pad, b_stack, *, out_dim, tile_rows=None):
    """Fused-MLP Pallas kernel over rows of x.

    x: (N, in_dim) in the matmul dtype (bf16); returns (N, out_dim) float32.
    """
    n_rows, in_dim = x.shape
    num_layers = len(w_pad)
    matmul_dtype = w_pad[0].dtype
    layer_widths = tuple(w.shape[1] for w in w_pad)

    # Row tiling: aim for >= 4 grid steps (>= 2 per v7x TensorCore so both
    # cores double-buffer), tiles capped at 1024 rows (~85%+ of HBM roofline).
    if tile_rows is None:
        tile_rows = min(1024, _round_up(max(pl.cdiv(n_rows, 4), 1), _BF16_SUBLANE))
    tile_rows = _round_up(tile_rows, _BF16_SUBLANE)
    n_pad_rows = _round_up(n_rows, tile_rows)
    if n_pad_rows != n_rows:
        x = jnp.pad(x, ((0, n_pad_rows - n_rows), (0, 0)))

    grid = (n_pad_rows // tile_rows,)

    # Input block: last dim == full array dim (in_dim), so no lane padding.
    in_specs = [pl.BlockSpec((tile_rows, in_dim), lambda i: (i, 0))]
    for w in w_pad:
        # Whole weight resident in VMEM every grid step (constant block index).
        # (pipeline_mode=pl.Buffered(1) would drop the dead 2nd buffer; omitted
        #  since weights total < 200 KB and VMEM is not a constraint here.)
        in_specs.append(pl.BlockSpec(w.shape, lambda i: (0, 0)))
    in_specs.append(pl.BlockSpec(b_stack.shape, lambda i: (0, 0)))

    # Lane-narrow output: only out_dim (=1) columns hit HBM per row.
    out_specs = pl.BlockSpec((tile_rows, out_dim), lambda i: (i, 0))

    kernel = functools.partial(
        _mlp_kernel,
        num_layers=num_layers,
        layer_widths=layer_widths,
        out_dim=out_dim,
        matmul_dtype=matmul_dtype,
    )

    out = pl.pallas_call(
        kernel,
        out_shape=jax.ShapeDtypeStruct((n_pad_rows, out_dim), jnp.float32),
        grid_spec=pltpu.PrefetchScalarGridSpec(
            num_scalar_prefetch=0,
            grid=grid,
            in_specs=in_specs,
            out_specs=out_specs,
        ),
        compiler_params=pltpu.CompilerParams(
            dimension_semantics=("parallel",),
        ),
    )(x, *w_pad, b_stack)

    return out[:n_rows]


def nlayer_discriminator_forward(src_gen, tgt_gen, w_pad, b_stack, *,
                                 out_dim, tile_rows=None):
    """Exact semantics of NLayerDiscriminator.forward (one fused kernel call)."""
    dim = src_gen.shape[1]
    matmul_dtype = w_pad[0].dtype
    # Cast to the matmul dtype as part of the unavoidable flatten/concat copy
    # (bf16 + unpadded feature dim -> small intermediate, one copy pass).
    x = src_gen.reshape(-1, dim).astype(matmul_dtype)
    y = tgt_gen.reshape(-1, dim).astype(matmul_dtype)
    n_x = x.shape[0]
    xy = jnp.concatenate([x, y], axis=0)   # fuse both passes: 1 launch, 1 weight DMA
    out = mlp_forward(xy, w_pad, b_stack, out_dim=out_dim, tile_rows=tile_rows)
    out_x = out[:n_x]
    out_y = out[n_x:]
    return out_x[..., None], out_y[..., None]   # .unsqueeze(-1)


def init_params(key, in_dim, out_dim, hidden_list):
    """Deterministic PyTorch-Linear-style init (uniform(-1/sqrt(fan_in), ...))."""
    dims = [in_dim] + list(hidden_list) + [out_dim]
    weights, biases = [], []
    for i in range(len(dims) - 1):
        d_in, d_out = dims[i], dims[i + 1]
        key, kw, kb = jax.random.split(key, 3)
        bound = 1.0 / jnp.sqrt(jnp.float32(d_in))
        w = jax.random.uniform(kw, (d_in, d_out), jnp.float32, -bound, bound)
        b = jax.random.uniform(kb, (1, d_out), jnp.float32, -bound, bound)
        weights.append(w)
        biases.append(b)
    return weights, biases


def _reference_mlp(x, weights, biases, matmul_dtype=jnp.bfloat16):
    """Pure-JAX reference with the same matmul-operand precision as the kernel
    (bf16 operands, f32 accumulation / bias / ReLU)."""
    h = x.astype(jnp.float32)
    for i, (w, b) in enumerate(zip(weights, biases)):
        h = jnp.dot(h.astype(matmul_dtype), w.astype(matmul_dtype),
                    preferred_element_type=jnp.float32) + jnp.reshape(b, (1, -1))
        if i < len(weights) - 1:
            h = jnp.maximum(h, 0.0)
    return h


if __name__ == "__main__":
    key = jax.random.PRNGKey(0)

    # Module config (small, deterministic)
    in_dim = 32
    out_dim = 1
    hidden_list = [64, 64]

    k1, k2, kp = jax.random.split(key, 3)
    # src_gen / tgt_gen: (N, dim) -> reshape(-1, dim) is identity here
    src_gen = jax.random.normal(k1, (128, in_dim), jnp.float32)
    tgt_gen = jax.random.normal(k2, (128, in_dim), jnp.float32)

    weights, biases = init_params(kp, in_dim, out_dim, hidden_list)

    # One-time parameter prep (padding / bf16 cast / bias stacking), hoisted
    # out of the per-call path.
    w_pad, b_stack = prepare_params(weights, biases)

    fwd = jax.jit(functools.partial(nlayer_discriminator_forward, out_dim=out_dim))
    out_src, out_tgt = fwd(src_gen, tgt_gen, w_pad, b_stack)
    out_src = jax.block_until_ready(out_src)
    out_tgt = jax.block_until_ready(out_tgt)

    # Sanity-check against a pure-JAX reference with matching matmul precision.
    ref_src = _reference_mlp(src_gen.reshape(-1, in_dim), weights, biases)[..., None]
    ref_tgt = _reference_mlp(tgt_gen.reshape(-1, in_dim), weights, biases)[..., None]
    assert out_src.shape == (128, out_dim, 1)
    assert out_tgt.shape == (128, out_dim, 1)
    assert jnp.allclose(out_src, ref_src, atol=1e-3, rtol=1e-3)
    assert jnp.allclose(out_tgt, ref_tgt, atol=1e-3, rtol=1e-3)

    print("KERNEL_OK")
</pallas_src>

<mosaic_0001>
module attributes {stable_mosaic.version = 11 : i64} {
  func.func @_mlp_kernel(%arg0: i32, %arg1: memref<64x32xbf16, #tpu.memory_space<vmem>>, %arg2: memref<32x128xbf16, #tpu.memory_space<vmem>>, %arg3: memref<128x128xbf16, #tpu.memory_space<vmem>>, %arg4: memref<128x128xbf16, #tpu.memory_space<vmem>>, %arg5: memref<3x128xf32, #tpu.memory_space<vmem>>, %arg6: memref<64x1xf32, #tpu.memory_space<vmem>>) attributes {dimension_semantics = [#tpu.dimension_semantics<parallel>], iteration_bounds = array<i64: 4>, scalar_prefetch = 0 : i64, scratch_operands = 0 : i64, tpu.core_type = #tpu.core_type<tc>, window_params = [{transform_indices = @transform_0, window_bounds = array<i64: 64, 32>}, {pipeline_mode = #tpu.pipeline_mode<synchronous>, transform_indices = @transform_1, window_bounds = array<i64: 32, 128>}, {pipeline_mode = #tpu.pipeline_mode<synchronous>, transform_indices = @transform_2, window_bounds = array<i64: 128, 128>}, {pipeline_mode = #tpu.pipeline_mode<synchronous>, transform_indices = @transform_3, window_bounds = array<i64: 128, 128>}, {pipeline_mode = #tpu.pipeline_mode<synchronous>, transform_indices = @transform_4, window_bounds = array<i64: 3, 128>}, {transform_indices = @transform_5, window_bounds = array<i64: 64, 1>}]} {
    %c0 = arith.constant 0 : index
    %c0_0 = arith.constant 0 : index
    %0 = vector.load %arg1[%c0, %c0_0] : memref<64x32xbf16, #tpu.memory_space<vmem>>, vector<64x32xbf16>
    %c0_1 = arith.constant 0 : index
    %c0_2 = arith.constant 0 : index
    %1 = vector.load %arg2[%c0_1, %c0_2] : memref<32x128xbf16, #tpu.memory_space<vmem>>, vector<32x128xbf16>
    %cst = arith.constant dense<0.000000e+00> : vector<64x128xf32>
    %2 = tpu.matmul %0, %1, %cst {dimension_numbers = #tpu.dot_dimension_numbers<[1], [0], [0], [1], [0, 0, 1, 1], [], []>} : vector<64x32xbf16>, vector<32x128xbf16>, vector<64x128xf32> -> vector<64x128xf32>
    %c0_3 = arith.constant 0 : index
    %c0_4 = arith.constant 0 : index
    %3 = vector.load %arg5[%c0_3, %c0_4] : memref<3x128xf32, #tpu.memory_space<vmem>>, vector<1x128xf32>
    %4 = vector.shape_cast %3 : vector<1x128xf32> to vector<128xf32>
    %5 = vector.shape_cast %4 : vector<128xf32> to vector<1x128xf32>
    %6 = vector.broadcast %5 : vector<1x128xf32> to vector<64x128xf32>
    %7 = arith.addf %2, %6 : vector<64x128xf32>
    %cst_5 = arith.constant 0.000000e+00 : f32
    %8 = vector.broadcast %cst_5 : f32 to vector<64x128xf32>
    %9 = arith.maximumf %7, %8 : vector<64x128xf32>
    %10 = arith.truncf %9 : vector<64x128xf32> to vector<64x128xbf16>
    %c0_6 = arith.constant 0 : index
    %c0_7 = arith.constant 0 : index
    %11 = vector.load %arg3[%c0_6, %c0_7] : memref<128x128xbf16, #tpu.memory_space<vmem>>, vector<128x128xbf16>
    %cst_8 = arith.constant dense<0.000000e+00> : vector<64x128xf32>
    %12 = tpu.matmul %10, %11, %cst_8 {dimension_numbers = #tpu.dot_dimension_numbers<[1], [0], [0], [1], [0, 0, 1, 1], [], []>} : vector<64x128xbf16>, vector<128x128xbf16>, vector<64x128xf32> -> vector<64x128xf32>
    %c1 = arith.constant 1 : index
    %c0_9 = arith.constant 0 : index
    %13 = vector.load %arg5[%c1, %c0_9] : memref<3x128xf32, #tpu.memory_space<vmem>>, vector<1x128xf32>
    %14 = vector.shape_cast %13 : vector<1x128xf32> to vector<128xf32>
    %15 = vector.shape_cast %14 : vector<128xf32> to vector<1x128xf32>
    %16 = vector.broadcast %15 : vector<1x128xf32> to vector<64x128xf32>
    %17 = arith.addf %12, %16 : vector<64x128xf32>
    %cst_10 = arith.constant 0.000000e+00 : f32
    %18 = vector.broadcast %cst_10 : f32 to vector<64x128xf32>
    %19 = arith.maximumf %17, %18 : vector<64x128xf32>
    %20 = arith.truncf %19 : vector<64x128xf32> to vector<64x128xbf16>
    %c0_11 = arith.constant 0 : index
    %c0_12 = arith.constant 0 : index
    %21 = vector.load %arg4[%c0_11, %c0_12] : memref<128x128xbf16, #tpu.memory_space<vmem>>, vector<128x128xbf16>
    %cst_13 = arith.constant dense<0.000000e+00> : vector<64x128xf32>
    %22 = tpu.matmul %20, %21, %cst_13 {dimension_numbers = #tpu.dot_dimension_numbers<[1], [0], [0], [1], [0, 0, 1, 1], [], []>} : vector<64x128xbf16>, vector<128x128xbf16>, vector<64x128xf32> -> vector<64x128xf32>
    %c2 = arith.constant 2 : index
    %c0_14 = arith.constant 0 : index
    %23 = vector.load %arg5[%c2, %c0_14] : memref<3x128xf32, #tpu.memory_space<vmem>>, vector<1x128xf32>
    %24 = vector.shape_cast %23 : vector<1x128xf32> to vector<128xf32>
    %25 = vector.shape_cast %24 : vector<128xf32> to vector<1x128xf32>
    %26 = vector.broadcast %25 : vector<1x128xf32> to vector<64x128xf32>
    %27 = arith.addf %22, %26 : vector<64x128xf32>
    %28 = vector.extract_strided_slice %27 {offsets = [0, 0], sizes = [64, 1], strides = [1, 1]} : vector<64x128xf32> to vector<64x1xf32>
    %c0_15 = arith.constant 0 : index
    %c0_16 = arith.constant 0 : index
    %29 = vector.load %arg6[%c0_15, %c0_16] : memref<64x1xf32, #tpu.memory_space<vmem>>, vector<64x1xf32>
    tpu.vector_store %arg6[%c0_15, %c0_16], %28 {strides = array<i32>} : memref<64x1xf32, #tpu.memory_space<vmem>>, vector<64x1xf32>,
    return
  }
  func.func @transform_0(%arg0: i32) -> (i32, i32) {
    %c0_i32 = arith.constant 0 : i32
    %c0_i32_0 = arith.constant 0 : i32
    return %arg0, %c0_i32 : i32, i32
  }
  func.func @transform_1(%arg0: i32) -> (i32, i32) {
    %c0_i32 = arith.constant 0 : i32
    %c0_i32_0 = arith.constant 0 : i32
    %c0_i32_1 = arith.constant 0 : i32
    return %c0_i32, %c0_i32_0 : i32, i32
  }
  func.func @transform_2(%arg0: i32) -> (i32, i32) {
    %c0_i32 = arith.constant 0 : i32
    %c0_i32_0 = arith.constant 0 : i32
    %c0_i32_1 = arith.constant 0 : i32
    return %c0_i32, %c0_i32_0 : i32, i32
  }
  func.func @transform_3(%arg0: i32) -> (i32, i32) {
    %c0_i32 = arith.constant 0 : i32
    %c0_i32_0 = arith.constant 0 : i32
    %c0_i32_1 = arith.constant 0 : i32
    return %c0_i32, %c0_i32_0 : i32, i32
  }
  func.func @transform_4(%arg0: i32) -> (i32, i32) {
    %c0_i32 = arith.constant 0 : i32
    %c0_i32_0 = arith.constant 0 : i32
    %c0_i32_1 = arith.constant 0 : i32
    return %c0_i32, %c0_i32_0 : i32, i32
  }
  func.func @transform_5(%arg0: i32) -> (i32, i32) {
    %c0_i32 = arith.constant 0 : i32
    %c0_i32_0 = arith.constant 0 : i32
    return %arg0, %c0_i32 : i32, i32
  }
}

</mosaic_0001>

<bundles_post_ra>
// kernel: nlayer_discriminator_forward.1
= control target key start
LH: loop header
LB: loop body
LE: loop exit
PB: predicated region body
PF: predicated region fallthrough
CT: control target
= control target key end

     0   :  { %s786_s18 = smov 0   ;;  %s882_s0 = inlined_call_operand.vmem [shape: bf16[256,32], index: 0, kind: input, shape index: {}]   ;;  %s883_s1 = inlined_call_operand.vmem [shape: bf16[32,128], index: 1, kind: input, shape index: {}]   ;;  %s884_s2 = inlined_call_operand.vmem [shape: bf16[128,128], index: 2, kind: input, shape index: {}]   ;;  %s885_s3 = inlined_call_operand.vmem [shape: bf16[128,128], index: 3, kind: input, shape index: {}]   ;;  %s886_s4 = inlined_call_operand.vmem [shape: f32[3,128], index: 4, kind: input, shape index: {}]   ;;  %s887_s5 = inlined_call_operand.vmem [shape: f32[256,1], index: 5, kind: output, shape index: {}]  }
   0x1 LB: > { %s596_s19 = sadd.s32 4294967295, %s754_s18   ;;  %p600_p0 = scmp.ge.s32.totalorder %s754_s18, 1  ;;  %s754_s18 = sphi %s786_s18, %s15_s18  }
   0x2   : > { %p188_p1 = scmp.lt.s32.totalorder %s754_s18, 5 }
   0x4   : > { %p189_p2 = pnand %p600_p0, %p188_p1 }
   0x5   : > { %s601_s22 = sshll.u32 (!%p189_p2), %s596_s19, 3 }
   0x6   : > { %192 = sbr.rel (%p189_p2) target bundleno = 496 (0x1f0), region = 40  ;;  %p217_p3 = scmp.lt.s32.totalorder (!%p189_p2), %s601_s22, 31 }
   0xb   : > { %v704_v0 = vld [vmem:[%s883_s1 + $0x8] sm:$0xff]  ;;  %v703_v1 = vld [vmem:[%s883_s1] sm:$0xff]  ;;  %s889_s22 = smov (!%p217_p3, %s601_s22), 31  ;;  %vm275_vm0 = vcmask 261120   ;;  %v712_v4 = vld [vmem:[%s884_s2 + $0x38] sm:$0xff]  ;;  %vm531_vm1 = vcmask 7168  }
   0xc   : > { %294 = vmatpush.bf16.msra.mxu0 %v704_v0  ;;  %s602_s25 = sshll.u32 %s889_s22, 2  ;;  %395 = vmatpush.bf16.msra.mxu1 %v712_v4  ;;  %v711_v5 = vld [vmem:[%s884_s2 + $0x30] sm:$0xff]  ;;  %v710_v6 = vld [vmem:[%s884_s2 + $0x28] sm:$0xff]  ;;  %v709_v7 = vld [vmem:[%s884_s2 + $0x20] sm:$0xff]  ;;  %s604_s17 = sshll.u32 %s889_s22, 3 }
   0xd   : > { %s220_s28 = scalar_lea.vmem %s882_s0, %s602_s25  ;;  %721 = vmatpush.bf16.msra.mxu3 %v712_v4  ;;  %v708_v10 = vld [vmem:[%s884_s2 + $0x18] sm:$0xff]  ;;  %v707_v11 = vld [vmem:[%s884_s2 + $0x10] sm:$0xff]  ;;  %v706_v12 = vld [vmem:[%s884_s2 + $0x8] sm:$0xff]  ;;  %s226_s24 = scalar_lea.vmem %s887_s5, %s604_s17 }
   0xe   : > { %v699_v2 = vld [vmem:[%s220_s28] sm:$0xff]  ;;  %v700_v3 = vld [vmem:[%s220_s28 + $0x8] sm:$0xff]  ;;  %v701_v8 = vld [vmem:[%s220_s28 + $0x10] sm:$0xff] }
   0xf   : > { %v702_v9 = vld [vmem:[%s220_s28 + $0x18] sm:$0xff]  ;;  %v705_v13 = vld [vmem:[%s884_s2] sm:$0xff]  ;;  %v719_v31 = vld [vmem:[%s885_s3 + $0x30] sm:$0xff] }
  0x10   : > { %295 = vmatpush.bf16.msra.mxu0 %v703_v1  ;;  %396 = vmatpush.bf16.msra.mxu1 %v711_v5  ;;  %v745_v15 = vld [vmem:[%s886_s4] ss:$0 sm:$0xff]  ;;  %v720_v29 = vld [vmem:[%s885_s3 + $0x38] sm:$0xff]  ;;  %v718_v32 = vld [vmem:[%s885_s3 + $0x28] sm:$0xff] }
  0x11   : > { %722 = vmatpush.bf16.msra.mxu3 %v711_v5  ;;  %729 = vmatpush.bf16.msra.mxu2 %v720_v29  ;;  %v717_v36 = vld [vmem:[%s885_s3 + $0x20] sm:$0xff]  ;;  %v716_v47 = vld [vmem:[%s885_s3 + $0x18] sm:$0xff]  ;;  %v715_v48 = vld [vmem:[%s885_s3 + $0x10] sm:$0xff] }
  0x12   : > { %v714_v49 = vld [vmem:[%s885_s3 + $0x8] sm:$0xff]  ;;  %v713_v50 = vld [vmem:[%s885_s3] sm:$0xff] }
  0x13   : > { %629 = vmatmul.msk.bf16.vlgmr.msra.gmra.mxu0 %vm275_vm0, %v699_v2  ;;  %v746_v52 = vld [vmem:[%s886_s4 + $0x1] ss:$0 sm:$0xff] }
  0x14   : > { %397 = vmatpush.bf16.msra.mxu1 %v710_v6 }
  0x15   : > { %723 = vmatpush.bf16.msra.mxu3 %v710_v6  ;;  %730 = vmatpush.bf16.msra.mxu2 %v719_v31 }
  0x18   : > { %398 = vmatpush.bf16.msra.mxu1 %v709_v7 }
  0x19   : > { %724 = vmatpush.bf16.msra.mxu3 %v709_v7  ;;  %731 = vmatpush.bf16.msra.mxu2 %v718_v32 }
  0x1c   : > { %399 = vmatpush.bf16.msra.mxu1 %v708_v10 }
  0x1d   : > { %725 = vmatpush.bf16.msra.mxu3 %v708_v10  ;;  %732 = vmatpush.bf16.msra.mxu2 %v717_v36 }
  0x20   : > { %400 = vmatpush.bf16.msra.mxu1 %v707_v11 }
  0x21   : > { %726 = vmatpush.bf16.msra.mxu3 %v707_v11  ;;  %733 = vmatpush.bf16.msra.mxu2 %v716_v47 }
  0x23   : > { %630 = vmatmul.msk.bf16.gmra.mxu0 %vm275_vm0, %v700_v3 }
  0x24   : > { %401 = vmatpush.bf16.msra.mxu1 %v706_v12 }
  0x25   : > { %727 = vmatpush.bf16.msra.mxu3 %v706_v12  ;;  %734 = vmatpush.bf16.msra.mxu2 %v715_v48 }
  0x28   : > { %402 = vmatpush.bf16.msra.mxu1 %v705_v13 }
  0x29   : > { %728 = vmatpush.bf16.msra.mxu3 %v705_v13  ;;  %735 = vmatpush.bf16.msra.mxu2 %v714_v49 }
  0x2c   : > { %502 = vmatpush.bf16.msrb.mxu1 %v720_v29 }
  0x2d   : > { %736 = vmatpush.bf16.msra.mxu2 %v713_v50 }
  0x30   : > { %503 = vmatpush.bf16.msrb.mxu1 %v719_v31 }
  0x33   : > { %631 = vmatmul.msk.bf16.gmra.mxu0 %vm275_vm0, %v701_v8 }
  0x34   : > { %504 = vmatpush.bf16.msrb.mxu1 %v718_v32 }
  0x38   : > { %505 = vmatpush.bf16.msrb.mxu1 %v717_v36 }
  0x3c   : > { %506 = vmatpush.bf16.msrb.mxu1 %v716_v47 }
  0x40   : > { %507 = vmatpush.bf16.msrb.mxu1 %v715_v48 }
  0x43   : > { %632 = vmatmul.msk.bf16.gmra.mxu0 %vm275_vm0, %v702_v9 }
  0x44   : > { %508 = vmatpush.bf16.msrb.mxu1 %v714_v49 }
  0x48   : > { %509 = vmatpush.bf16.msrb.mxu1 %v713_v50 }
  0x90   : > { %v297_v14 = vpop.f32.mrf.mxu0 }
  0x91   : > { %v298_v16 = vadd.f32 %v745_v15, %v297_v14 }
  0x93   : > { %v317_v19 = vmax.f32 %v298_v16, 0.0  ;;  %v747_v16 = vld [vmem:[%s886_s4 + $0x2] ss:$0 sm:$0xff] }
  0x98   : > { %v299_v17 = vpop.f32.mrf.mxu0 }
  0x99   : > { %v300_v18 = vadd.f32 %v745_v15, %v299_v17 }
  0x9b   : > { %v318_v20 = vmax.f32 %v300_v18, 0.0 }
  0x9d   : > { %v325_v21 = vpack.c.bf16 %v318_v20, %v317_v19 }
  0x9f   : > { %403 = vmatmul.bf16.vlgmr.msra.gmra.mxu1 %v325_v21 }
  0xa0   : > { %v302_v22 = vpop.f32.mrf.mxu0 }
  0xa1   : > { %v303_v23 = vadd.f32 %v745_v15, %v302_v22 }
  0xa3   : > { %v319_v26 = vmax.f32 %v303_v23, 0.0 }
  0xa8   : > { %v304_v24 = vpop.f32.mrf.mxu0 }
  0xa9   : > { %v305_v25 = vadd.f32 %v745_v15, %v304_v24 }
  0xab   : > { %v320_v27 = vmax.f32 %v305_v25, 0.0 }
  0xad   : > { %v326_v28 = vpack.c.bf16 %v320_v27, %v319_v26 }
  0xaf   : > { %408 = vmatmul.bf16.vlgmr.msra.gmra.mxu3 %v326_v28 }
  0xb0   : > { %v307_v30 = vpop.f32.mrf.mxu0 }
  0xb1   : > { %v308_v33 = vadd.f32 %v745_v15, %v307_v30 }
  0xb3   : > { %v321_v37 = vmax.f32 %v308_v33, 0.0 }
  0xb8   : > { %v309_v34 = vpop.f32.mrf.mxu0 }
  0xb9   : > { %v310_v35 = vadd.f32 %v745_v15, %v309_v34 }
  0xbb   : > { %v322_v38 = vmax.f32 %v310_v35, 0.0 }
  0xbd   : > { %v327_v39 = vpack.c.bf16 %v322_v38, %v321_v37 }
  0xbf   : > { %413 = vmatmul.bf16.gmra.mxu3 %v327_v39 }
  0xc0   : > { %v312_v40 = vpop.f32.mrf.mxu0 }
  0xc1   : > { %v313_v41 = vadd.f32 %v745_v15, %v312_v40 }
  0xc3   : > { %v323_v44 = vmax.f32 %v313_v41, 0.0 }
  0xc8   : > { %v314_v42 = vpop.f32.mrf.mxu0 }
  0xc9   : > { %v315_v43 = vadd.f32 %v745_v15, %v314_v42 }
  0xcb   : > { %v324_v45 = vmax.f32 %v315_v43, 0.0 }
  0xcd   : > { %v328_v46 = vpack.c.bf16 %v324_v45, %v323_v44 }
  0xcf   : > { %418 = vmatmul.bf16.gmra.mxu3 %v328_v46 }
 0x11c   : > { %v404_v51 = vpop.f32.mrf.mxu1 }
 0x11d   : > { %v405_v53 = vadd.f32 %v746_v52, %v404_v51 }
 0x11f   : > { %v424_v56 = vmax.f32 %v405_v53, 0.0 }
 0x124   : > { %v406_v54 = vpop.f32.mrf.mxu1 }
 0x125   : > { %v407_v55 = vadd.f32 %v746_v52, %v406_v54 }
 0x127   : > { %v425_v57 = vmax.f32 %v407_v55, 0.0 }
 0x129   : > { %v432_v58 = vpack.c.bf16 %v425_v57, %v424_v56 }
 0x12b   : > { %510 = vmatmul.bf16.vlgmr.msrb.gmra.mxu1 %v432_v58 }
 0x132   : > { %v409_v59 = vpop.f32.mrf.mxu3 }
 0x133   : > { %v410_v60 = vadd.f32 %v746_v52, %v409_v59 }
 0x135   : > { %v426_v63 = vmax.f32 %v410_v60, 0.0 }
 0x13a   : > { %v411_v61 = vpop.f32.mrf.mxu3 }
 0x13b   : > { %v412_v62 = vadd.f32 %v746_v52, %v411_v61 }
 0x13d   : > { %v427_v0 = vmax.f32 %v412_v62, 0.0 }
 0x13f   : > { %v433_v1 = vpack.c.bf16 %v427_v0, %v426_v63 }
 0x141   : > { %515 = vmatmul.bf16.vlgmr.msra.gmra.mxu2 %v433_v1 }
 0x142   : > { %v414_v2 = vpop.f32.mrf.mxu3 }
 0x143   : > { %v415_v3 = vadd.f32 %v746_v52, %v414_v2 }
 0x145   : > { %v428_v6 = vmax.f32 %v415_v3, 0.0 }
 0x14a   : > { %v416_v4 = vpop.f32.mrf.mxu3 }
 0x14b   : > { %v417_v5 = vadd.f32 %v746_v52, %v416_v4 }
 0x14d   : > { %v429_v7 = vmax.f32 %v417_v5, 0.0 }
 0x14f   : > { %v434_v8 = vpack.c.bf16 %v429_v7, %v428_v6 }
 0x151   : > { %520 = vmatmul.bf16.gmra.mxu2 %v434_v8 }
 0x152   : > { %v419_v9 = vpop.f32.mrf.mxu3 }
 0x153   : > { %v420_v10 = vadd.f32 %v746_v52, %v419_v9 }
 0x155   : > { %v430_v13 = vmax.f32 %v420_v10, 0.0 }
 0x15a   : > { %v421_v11 = vpop.f32.mrf.mxu3 }
 0x15b   : > { %v422_v12 = vadd.f32 %v746_v52, %v421_v11 }
 0x15d   : > { %v431_v14 = vmax.f32 %v422_v12, 0.0 }
 0x15f   : > { %v435_v15 = vpack.c.bf16 %v431_v14, %v430_v13 }
 0x161   : > { %525 = vmatmul.bf16.gmra.mxu2 %v435_v15 }
 0x1a8   : > { %v511_v17 = vpop.f32.mrf.mxu1 }
 0x1a9   : > { %v512_v18 = vadd.f32 %v747_v16, %v511_v17 }
 0x1ab   : > { %532 = vst.msk [vmem:[%s226_s24] sm:$0xff] %vm531_vm1, %v512_v18 }
 0x1b0   : > { %v513_v19 = vpop.f32.mrf.mxu1 }
 0x1b1   : > { %v514_v20 = vadd.f32 %v747_v16, %v513_v19 }
 0x1b3   : > { %533 = vst.msk [vmem:[%s226_s24 + $0x8] sm:$0xff] %vm531_vm1, %v514_v20 }
 0x1c4   : > { %v516_v21 = vpop.f32.mrf.mxu2 }
 0x1c5   : > { %v517_v22 = vadd.f32 %v747_v16, %v516_v21 }
 0x1c7   : > { %534 = vst.msk [vmem:[%s226_s24 + $0x10] sm:$0xff] %vm531_vm1, %v517_v22 }
 0x1cc   : > { %v518_v23 = vpop.f32.mrf.mxu2 }
 0x1cd   : > { %v519_v24 = vadd.f32 %v747_v16, %v518_v23 }
 0x1cf   : > { %535 = vst.msk [vmem:[%s226_s24 + $0x18] sm:$0xff] %vm531_vm1, %v519_v24 }
 0x1d4   : > { %v521_v25 = vpop.f32.mrf.mxu2 }
 0x1d5   : > { %v522_v26 = vadd.f32 %v747_v16, %v521_v25 }
 0x1d7   : > { %536 = vst.msk [vmem:[%s226_s24 + $0x20] sm:$0xff] %vm531_vm1, %v522_v26 }
 0x1dc   : > { %v523_v27 = vpop.f32.mrf.mxu2 }
 0x1dd   : > { %v524_v28 = vadd.f32 %v747_v16, %v523_v27 }
 0x1df   : > { %537 = vst.msk [vmem:[%s226_s24 + $0x28] sm:$0xff] %vm531_vm1, %v524_v28 }
 0x1e4   : > { %v526_v29 = vpop.f32.mrf.mxu2 }
 0x1e5   : > { %v527_v30 = vadd.f32 %v747_v16, %v526_v29 }
 0x1e7   : > { %538 = vst.msk [vmem:[%s226_s24 + $0x30] sm:$0xff] %vm531_vm1, %v527_v30 }
 0x1ec   : > { %v528_v31 = vpop.f32.mrf.mxu2 }
 0x1ed   : > { %v529_v32 = vadd.f32 %v747_v16, %v528_v31 }
 0x1ef   : > { %539 = vst.msk [vmem:[%s226_s24 + $0x38] sm:$0xff] %vm531_vm1, %v529_v32 }
 0x1f0 PF: > { %s15_s18 = sadd.s32 1, %s754_s18  }
 0x1f1   : > { %p12_p4 = scmp.ge.s32.totalorder %s15_s18, 6  }
 0x1f3   :  { %14 = sbr.rel (!%p12_p4) target bundleno = 1 (0x1), region = 70 }

</bundles_post_ra>
